<compile_context>
chip_gen: v7x
topology: tpu7x:2x2x1
jax: 0.10.0
libtpu: 0.0.40
codegen_flags: <defaults>
</compile_context>

<pallas_src>
import functools

import jax
import jax.numpy as jnp
from jax.experimental import pallas as pl
from jax.experimental.pallas import tpu as pltpu

LANE = 128


def _round_up(x, m):
    return ((x + m - 1) // m) * m


def _mlp_kernel(n_layers, x_ref, w_ref, b_ref, o_ref):
    """x_ref: (TB,128) bf16; w_ref: (n_layers,128,128) bf16; b_ref: (8,128) f32."""
    h = x_ref[...]                                   # bf16, lane-dense
    acc = None
    for l in range(n_layers):                        # static Python loop (3 layers)
        acc = jnp.dot(h, w_ref[l], preferred_element_type=jnp.float32)
        acc = acc + b_ref[l:l + 1, :]                # f32 epilogue (v5e-safe)
        if l < n_layers - 1:
            acc = jnp.maximum(acc, 0.0)              # ReLU; Dropout identity at inference
            h = acc.astype(jnp.bfloat16)             # bf16 operand for next MXU dot
    o_ref[...] = acc.astype(o_ref.dtype)


@functools.partial(jax.jit, static_argnames=("num_experts",))
def policy_network_forward(x, prepared, num_experts):
    """x: (B, state_dim) float32. prepared: stacked lane-padded bf16 weights / f32 biases."""
    w, b = prepared["w"], prepared["b"]
    n_layers = w.shape[0]
    B, state_dim = x.shape

    # Lane-dense bf16 activation slab; batch padded to a sublane-friendly tile size.
    TB = min(_round_up(B, 8), 256)
    B_pad = _round_up(B, TB)
    x_p = jnp.zeros((B_pad, LANE), jnp.bfloat16).at[:B, :state_dim].set(
        x.astype(jnp.bfloat16))

    kernel = functools.partial(_mlp_kernel, n_layers)
    out_padded = pl.pallas_call(
        kernel,
        out_shape=jax.ShapeDtypeStruct((B_pad, LANE), jnp.float32),
        grid=(B_pad // TB,),
        in_specs=[
            pl.BlockSpec((TB, LANE), lambda i: (i, 0)),                    # activations
            pl.BlockSpec((n_layers, LANE, LANE), lambda i: (0, 0, 0)),     # weights (resident)
            pl.BlockSpec((b.shape[0], LANE), lambda i: (0, 0)),            # biases (resident)
        ],
        out_specs=pl.BlockSpec((TB, LANE), lambda i: (i, 0)),
        compiler_params=pltpu.CompilerParams(
            dimension_semantics=("parallel",)),                            # 2 TCs on v7x
    )(x_p, w, b)
    return out_padded[:B, :num_experts]


def init_policy_params(key, state_dim, num_experts, hidden_dims=(128, 64)):
    """Xavier-normal weights, zero biases (matches _init_weights); stored as (in, out)."""
    params = {}
    dims = [state_dim] + list(hidden_dims) + [num_experts]
    for idx, (fan_in, fan_out) in enumerate(zip(dims[:-1], dims[1:]), start=1):
        key, sub = jax.random.split(key)
        std = (2.0 / (fan_in + fan_out)) ** 0.5
        params[f"w{idx}"] = std * jax.random.normal(sub, (fan_in, fan_out), jnp.float32)
        params[f"b{idx}"] = jnp.zeros((1, fan_out), jnp.float32)
    return params


def prepare_params(params, state_dim, num_experts, hidden_dims=(128, 64)):
    """Stack layers: weights -> (n_layers,128,128) bf16, biases -> (8,128) f32 (rows 0..n-1)."""
    dims = [state_dim] + list(hidden_dims) + [num_experts]
    n_layers = len(dims) - 1
    assert all(d <= LANE for d in dims), "stacked layout assumes all feature dims <= 128"
    b_rows = _round_up(max(n_layers, 8), 8)
    w_stack = jnp.zeros((n_layers, LANE, LANE), jnp.float32)
    b_stack = jnp.zeros((b_rows, LANE), jnp.float32)
    for idx in range(n_layers):
        w = params[f"w{idx + 1}"]
        b = params[f"b{idx + 1}"]
        w_stack = w_stack.at[idx, : w.shape[0], : w.shape[1]].set(w)
        b_stack = b_stack.at[idx, : b.shape[1]].set(b[0])
    return {"w": w_stack.astype(jnp.bfloat16),   # bf16 MXU operands
            "b": b_stack}                        # keep bias adds in f32


def reference_forward_f32(x, params):
    h = jnp.maximum(x @ params["w1"] + params["b1"], 0.0)
    h = jnp.maximum(h @ params["w2"] + params["b2"], 0.0)
    return h @ params["w3"] + params["b3"]


def reference_forward_bf16(x, prepared, num_experts, state_dim):
    """Mirrors the kernel's bf16-operand / f32-accumulate arithmetic on padded buffers."""
    w, b = prepared["w"], prepared["b"]
    n_layers = w.shape[0]
    B = x.shape[0]
    h = jnp.zeros((B, LANE), jnp.bfloat16).at[:, :state_dim].set(x.astype(jnp.bfloat16))
    acc = None
    for l in range(n_layers):
        acc = jnp.dot(h, w[l], preferred_element_type=jnp.float32) + b[l:l + 1, :]
        if l < n_layers - 1:
            h = jnp.maximum(acc, 0.0).astype(jnp.bfloat16)
    return acc[:, :num_experts]


if __name__ == "__main__":
    key = jax.random.PRNGKey(0)
    B, state_dim, num_experts = 8, 32, 8
    hidden_dims = (128, 64)

    k_param, k_x = jax.random.split(key)
    params = init_policy_params(k_param, state_dim, num_experts, hidden_dims)
    prepared = prepare_params(params, state_dim, num_experts, hidden_dims)
    x = jax.random.normal(k_x, (B, state_dim), jnp.float32)

    logits = jax.block_until_ready(policy_network_forward(x, prepared, num_experts))
    assert logits.shape == (B, num_experts)

    # Exact-arithmetic reference (same bf16 casts / f32 accumulation / padding).
    ref_bf16 = reference_forward_bf16(x, prepared, num_experts, state_dim)
    assert jnp.allclose(logits, ref_bf16, atol=2e-2, rtol=2e-2), "mismatch vs bf16 reference"

    # Loose check against the full-f32 PyTorch-equivalent forward (bf16 weight quantization).
    ref_f32 = reference_forward_f32(x, params)
    assert jnp.allclose(logits, ref_f32, atol=1e-1, rtol=1e-1), "mismatch vs f32 reference"

    print("KERNEL_OK")
</pallas_src>

<mosaic_0001>
module attributes {stable_mosaic.version = 11 : i64} {
  func.func @_mlp_kernel(%arg0: i32, %arg1: memref<8x128xbf16, #tpu.memory_space<vmem>>, %arg2: memref<3x128x128xbf16, #tpu.memory_space<vmem>>, %arg3: memref<8x128xf32, #tpu.memory_space<vmem>>, %arg4: memref<8x128xf32, #tpu.memory_space<vmem>>) attributes {dimension_semantics = [#tpu.dimension_semantics<parallel>], iteration_bounds = array<i64: 1>, scalar_prefetch = 0 : i64, scratch_operands = 0 : i64, tpu.core_type = #tpu.core_type<tc>, window_params = [{transform_indices = @transform_0, window_bounds = array<i64: 8, 128>}, {pipeline_mode = #tpu.pipeline_mode<synchronous>, transform_indices = @transform_1, window_bounds = array<i64: 3, 128, 128>}, {pipeline_mode = #tpu.pipeline_mode<synchronous>, transform_indices = @transform_2, window_bounds = array<i64: 8, 128>}, {transform_indices = @transform_3, window_bounds = array<i64: 8, 128>}]} {
    %c0 = arith.constant 0 : index
    %c0_0 = arith.constant 0 : index
    %0 = vector.load %arg1[%c0, %c0_0] : memref<8x128xbf16, #tpu.memory_space<vmem>>, vector<8x128xbf16>
    %c0_1 = arith.constant 0 : index
    %c0_2 = arith.constant 0 : index
    %c0_3 = arith.constant 0 : index
    %1 = vector.load %arg2[%c0_1, %c0_2, %c0_3] : memref<3x128x128xbf16, #tpu.memory_space<vmem>>, vector<1x128x128xbf16>
    %2 = vector.shape_cast %1 : vector<1x128x128xbf16> to vector<128x128xbf16>
    %cst = arith.constant dense<0.000000e+00> : vector<8x128xf32>
    %3 = tpu.matmul %0, %2, %cst {dimension_numbers = #tpu.dot_dimension_numbers<[1], [0], [0], [1], [0, 0, 1, 1], [], []>} : vector<8x128xbf16>, vector<128x128xbf16>, vector<8x128xf32> -> vector<8x128xf32>
    %c0_4 = arith.constant 0 : index
    %c0_5 = arith.constant 0 : index
    %4 = vector.load %arg3[%c0_4, %c0_5] : memref<8x128xf32, #tpu.memory_space<vmem>>, vector<1x128xf32>
    %5 = vector.broadcast %4 : vector<1x128xf32> to vector<8x128xf32>
    %6 = arith.addf %3, %5 : vector<8x128xf32>
    %cst_6 = arith.constant 0.000000e+00 : f32
    %7 = vector.broadcast %cst_6 : f32 to vector<8x128xf32>
    %8 = arith.maximumf %6, %7 : vector<8x128xf32>
    %9 = arith.truncf %8 : vector<8x128xf32> to vector<8x128xbf16>
    %c1 = arith.constant 1 : index
    %c0_7 = arith.constant 0 : index
    %c0_8 = arith.constant 0 : index
    %10 = vector.load %arg2[%c1, %c0_7, %c0_8] : memref<3x128x128xbf16, #tpu.memory_space<vmem>>, vector<1x128x128xbf16>
    %11 = vector.shape_cast %10 : vector<1x128x128xbf16> to vector<128x128xbf16>
    %cst_9 = arith.constant dense<0.000000e+00> : vector<8x128xf32>
    %12 = tpu.matmul %9, %11, %cst_9 {dimension_numbers = #tpu.dot_dimension_numbers<[1], [0], [0], [1], [0, 0, 1, 1], [], []>} : vector<8x128xbf16>, vector<128x128xbf16>, vector<8x128xf32> -> vector<8x128xf32>
    %c1_10 = arith.constant 1 : index
    %c0_11 = arith.constant 0 : index
    %13 = vector.load %arg3[%c1_10, %c0_11] : memref<8x128xf32, #tpu.memory_space<vmem>>, vector<1x128xf32>
    %14 = vector.broadcast %13 : vector<1x128xf32> to vector<8x128xf32>
    %15 = arith.addf %12, %14 : vector<8x128xf32>
    %cst_12 = arith.constant 0.000000e+00 : f32
    %16 = vector.broadcast %cst_12 : f32 to vector<8x128xf32>
    %17 = arith.maximumf %15, %16 : vector<8x128xf32>
    %18 = arith.truncf %17 : vector<8x128xf32> to vector<8x128xbf16>
    %c2 = arith.constant 2 : index
    %c0_13 = arith.constant 0 : index
    %c0_14 = arith.constant 0 : index
    %19 = vector.load %arg2[%c2, %c0_13, %c0_14] : memref<3x128x128xbf16, #tpu.memory_space<vmem>>, vector<1x128x128xbf16>
    %20 = vector.shape_cast %19 : vector<1x128x128xbf16> to vector<128x128xbf16>
    %cst_15 = arith.constant dense<0.000000e+00> : vector<8x128xf32>
    %21 = tpu.matmul %18, %20, %cst_15 {dimension_numbers = #tpu.dot_dimension_numbers<[1], [0], [0], [1], [0, 0, 1, 1], [], []>} : vector<8x128xbf16>, vector<128x128xbf16>, vector<8x128xf32> -> vector<8x128xf32>
    %c2_16 = arith.constant 2 : index
    %c0_17 = arith.constant 0 : index
    %22 = vector.load %arg3[%c2_16, %c0_17] : memref<8x128xf32, #tpu.memory_space<vmem>>, vector<1x128xf32>
    %23 = vector.broadcast %22 : vector<1x128xf32> to vector<8x128xf32>
    %24 = arith.addf %21, %23 : vector<8x128xf32>
    %c0_18 = arith.constant 0 : index
    %c0_19 = arith.constant 0 : index
    %25 = vector.load %arg4[%c0_18, %c0_19] : memref<8x128xf32, #tpu.memory_space<vmem>>, vector<8x128xf32>
    tpu.vector_store %arg4[%c0_18, %c0_19], %24 {strides = array<i32>} : memref<8x128xf32, #tpu.memory_space<vmem>>, vector<8x128xf32>,
    return
  }
  func.func @transform_0(%arg0: i32) -> (i32, i32) {
    %c0_i32 = arith.constant 0 : i32
    %c0_i32_0 = arith.constant 0 : i32
    return %arg0, %c0_i32 : i32, i32
  }
  func.func @transform_1(%arg0: i32) -> (i32, i32, i32) {
    %c0_i32 = arith.constant 0 : i32
    %c0_i32_0 = arith.constant 0 : i32
    %c0_i32_1 = arith.constant 0 : i32
    %c0_i32_2 = arith.constant 0 : i32
    return %c0_i32, %c0_i32_0, %c0_i32_1 : i32, i32, i32
  }
  func.func @transform_2(%arg0: i32) -> (i32, i32) {
    %c0_i32 = arith.constant 0 : i32
    %c0_i32_0 = arith.constant 0 : i32
    %c0_i32_1 = arith.constant 0 : i32
    return %c0_i32, %c0_i32_0 : i32, i32
  }
  func.func @transform_3(%arg0: i32) -> (i32, i32) {
    %c0_i32 = arith.constant 0 : i32
    %c0_i32_0 = arith.constant 0 : i32
    return %arg0, %c0_i32 : i32, i32
  }
}

</mosaic_0001>

<bundles_post_ra>
// kernel: policy_network_forward.1
= control target key start
LH: loop header
LB: loop body
LE: loop exit
PB: predicated region body
PF: predicated region fallthrough
CT: control target
= control target key end

     0   :  { %8 = vsyncpa [#allocation3], 0  ;;  %s664_s0 = inlined_call_operand.vmem [shape: bf16[8,128], index: 0, kind: input, shape index: {}]   ;;  %s665_s1 = inlined_call_operand.hbm [shape: bf16[3,128,128], index: 1, kind: input, shape index: {}]   ;;  %s666_s2 = inlined_call_operand.vmem [shape: f32[8,128], index: 2, kind: input, shape index: {}]   ;;  %s667_s3 = inlined_call_operand.hbm [shape: f32[8,128], index: 3, kind: output, shape index: {}]  }
   0x1   :  { %9 = vsyncpa [#allocation4], 0  ;;  %s572_s12 = smov [#allocation2]   ;;  %s524_s16 = scalar_lea.hbm %s665_s1, 3072 }
   0x2   :  { %s17_s13 = sshll.u32 %s572_s12, 4  ;;  %p525_p0 = scmp.ne.s32.totalorder %s665_s1, %s524_s16  ;;  %s18_s13 = int_to_ptr.vmem [resolvable:$true] %s17_s13 }
   0x3   :  { %p528_p1 = scmp.lt.u32.totalorder %s524_s16, %s665_s1 }
   0x5   :  { %p530_p2 = pnand %p528_p1, %p525_p0 }
   0x7   :  { %533 = shalt.err (!%p530_p2)
}
   0x8   :  { %s534_s21 = scalar_lea.vmem %s18_s13, 3072  ;;  %p539_p4 = scmp.lt.s32.totalorder %s18_s13, %s18_s13 }
   0x9   :  { %p535_p3 = scmp.ne.s32.totalorder %s18_s13, %s534_s21  ;;  %p540_p5 = scmp.lt.s32.totalorder %s534_s21, %s534_s21 }
   0xb   :  { %p541_p6 = por %p540_p5, %p539_p4 }
   0xd   :  { %p542_p7 = pnand %p541_p6, %p535_p3 }
   0xf   :  { %545 = shalt.err (!%p542_p7)
}
  0x10   :  { %s573_s22 = smov 64   ;;  %s574_s23 = smov 4  }
  0x11   :  { %23 = dma.hbm_to_vmem [thread:$0]  %s665_s1, 3072, %s18_s13, [#allocation3], %s573_s22, %s573_s22, %s574_s23  }
  0x12   :  { %568 = dma.done.wait [#allocation3], 3072  }
  0x13   :  { %569 = vsyncadd [#allocation3], 4294964224  ;;  %v575_v0 = vmov 0.0   ;;  %vm576_vm0 = vmmov 0   ;;  %v500_v1 = vld [vmem:[#allocation2] sm:$0xff]   ;;  %v501_v2 = vld [vmem:[#allocation2 + $0x8] sm:$0xff]  }
  0x14   :  { %434 = vmatprep.subr.bf16.mxu0 %v575_v0  ;;  %450 = vmatprep.mubr.msk.bf16.mxu0 %vm576_vm0, %v575_v0  ;;  %v502_v3 = vld [vmem:[#allocation2 + $0x10] sm:$0xff]   ;;  %v508_v4 = vld [vmem:[#allocation2 + $0x40] sm:$0xff]   ;;  %v503_v5 = vld [vmem:[#allocation2 + $0x18] sm:$0xff]   ;;  %s577_s5 = smov [#allocation5]  }
  0x15   :  { %454 = vmatprep.subr.bf16.mxu1 %v575_v0  ;;  %470 = vmatprep.mubr.msk.bf16.mxu1 %vm576_vm0, %v575_v0  ;;  %v509_v6 = vld [vmem:[#allocation2 + $0x48] sm:$0xff]   ;;  %v504_v7 = vld [vmem:[#allocation2 + $0x20] sm:$0xff]   ;;  %v510_v8 = vld [vmem:[#allocation2 + $0x50] sm:$0xff]   ;;  %s371_s6 = sshll.u32 %s577_s5, 4  ;;  %s372_s6 = int_to_ptr.vmem [resolvable:$true] %s371_s6 }
  0x16   :  { %435 = vmatpush3.bf16.msra.mxu0 %v500_v1  ;;  %455 = vmatpush3.bf16.msra.mxu1 %v508_v4  ;;  %v505_v9 = vld [vmem:[#allocation2 + $0x28] sm:$0xff]   ;;  %v511_v10 = vld [vmem:[#allocation2 + $0x58] sm:$0xff]   ;;  %v506_v11 = vld [vmem:[#allocation2 + $0x30] sm:$0xff]   ;;  %s546_s7 = scalar_lea.vmem %s372_s6, 128  ;;  %p551_p9 = scmp.lt.s32.totalorder %s372_s6, %s372_s6 }
  0x17   :  { %436 = vmatprep.subr.bf16.mxu0 %v575_v0  ;;  %456 = vmatprep.subr.bf16.mxu1 %v575_v0  ;;  %v512_v12 = vld [vmem:[#allocation2 + $0x60] sm:$0xff]   ;;  %v507_v13 = vld [vmem:[#allocation2 + $0x38] sm:$0xff]   ;;  %v513_v14 = vld [vmem:[#allocation2 + $0x68] sm:$0xff]   ;;  %p547_p8 = scmp.ne.s32.totalorder %s372_s6, %s546_s7  ;;  %p552_p10 = scmp.lt.s32.totalorder %s546_s7, %s546_s7 }
  0x18   :  { %v30_v15 = vld [vmem:[%s664_s0] sm:$0xf]  ;;  %v514_v16 = vld [vmem:[#allocation2 + $0x70] sm:$0xff]   ;;  %v515_v17 = vld [vmem:[#allocation2 + $0x78] sm:$0xff]  }
  0x19   :  { %v516_v18 = vld [vmem:[#allocation2 + $0x80] sm:$0xff]   ;;  %v517_v19 = vld [vmem:[#allocation2 + $0x88] sm:$0xff]   ;;  %v518_v20 = vld [vmem:[#allocation2 + $0x90] sm:$0xff]   ;;  %p553_p11 = por %p552_p10, %p551_p9 }
  0x1a   :  { %437 = vmatpush3.bf16.msra.mxu0 %v501_v2  ;;  %457 = vmatpush3.bf16.msra.mxu1 %v509_v6  ;;  %v519_v21 = vld [vmem:[#allocation2 + $0x98] sm:$0xff]   ;;  %v520_v22 = vld [vmem:[#allocation2 + $0xa0] sm:$0xff]   ;;  %v521_v23 = vld [vmem:[#allocation2 + $0xa8] sm:$0xff]  }
  0x1b   :  { %438 = vmatprep.subr.bf16.mxu0 %v575_v0  ;;  %458 = vmatprep.subr.bf16.mxu1 %v575_v0  ;;  %v380_v24 = vld [vmem:[%s666_s2] ss:$0 sm:$0xff]  ;;  %v522_v32 = vld [vmem:[#allocation2 + $0xb0] sm:$0xff]   ;;  %v523_v33 = vld [vmem:[#allocation2 + $0xb8] sm:$0xff]   ;;  %p554_p12 = pnand %p553_p11, %p547_p8 }
  0x1c   :  { %v389_v34 = vld [vmem:[%s666_s2 + $0x1] ss:$0 sm:$0xff]  ;;  %v398_v42 = vld [vmem:[%s666_s2 + $0x2] ss:$0 sm:$0xff] }
  0x1e   :  { %439 = vmatpush3.bf16.msra.mxu0 %v502_v3  ;;  %459 = vmatpush3.bf16.msra.mxu1 %v510_v8 }
  0x1f   :  { %440 = vmatprep.subr.bf16.mxu0 %v575_v0  ;;  %460 = vmatprep.subr.bf16.mxu1 %v575_v0 }
  0x22   :  { %441 = vmatpush3.bf16.msra.mxu0 %v503_v5  ;;  %461 = vmatpush3.bf16.msra.mxu1 %v511_v10 }
  0x23   :  { %442 = vmatprep.subr.bf16.mxu0 %v575_v0  ;;  %462 = vmatprep.subr.bf16.mxu1 %v575_v0 }
  0x26   :  { %443 = vmatpush3.bf16.msra.mxu0 %v504_v7  ;;  %463 = vmatpush3.bf16.msra.mxu1 %v512_v12 }
  0x27   :  { %444 = vmatprep.subr.bf16.mxu0 %v575_v0  ;;  %464 = vmatprep.subr.bf16.mxu1 %v575_v0 }
  0x2a   :  { %445 = vmatpush3.bf16.msra.mxu0 %v505_v9  ;;  %465 = vmatpush3.bf16.msra.mxu1 %v513_v14 }
  0x2b   :  { %446 = vmatprep.subr.bf16.mxu0 %v575_v0  ;;  %466 = vmatprep.subr.bf16.mxu1 %v575_v0 }
  0x2e   :  { %447 = vmatpush3.bf16.msra.mxu0 %v506_v11  ;;  %467 = vmatpush3.bf16.msra.mxu1 %v514_v16 }
  0x2f   :  { %448 = vmatprep.subr.bf16.mxu0 %v575_v0  ;;  %468 = vmatprep.subr.bf16.mxu1 %v575_v0 }
  0x32   :  { %449 = vmatpush3.bf16.msra.mxu0 %v507_v13  ;;  %469 = vmatpush3.bf16.msra.mxu1 %v515_v17 }
  0x33   :  { %474 = vmatprep.subr.bf16.mxu0 %v575_v0 }
  0x35   :  { %451 = vmatmul.mubr.bf16.vlgmr.msra.gmra.mrb[0].mxu0 %v30_v15 }
  0x36   :  { %490 = vmatprep.mubr.msk.bf16.mxu0 %vm576_vm0, %v575_v0  ;;  %475 = vmatpush3.bf16.msra.mxu0 %v516_v18 }
  0x37   :  { %476 = vmatprep.subr.bf16.mxu0 %v575_v0 }
  0x3a   :  { %477 = vmatpush3.bf16.msra.mxu0 %v517_v19 }
  0x3b   :  { %478 = vmatprep.subr.bf16.mxu0 %v575_v0 }
  0x3e   :  { %479 = vmatpush3.bf16.msra.mxu0 %v518_v20 }
  0x3f   :  { %480 = vmatprep.subr.bf16.mxu0 %v575_v0 }
  0x42   :  { %481 = vmatpush3.bf16.msra.mxu0 %v519_v21 }
  0x43   :  { %482 = vmatprep.subr.bf16.mxu0 %v575_v0 }
  0x46   :  { %483 = vmatpush3.bf16.msra.mxu0 %v520_v22 }
  0x47   :  { %484 = vmatprep.subr.bf16.mxu0 %v575_v0 }
  0x4a   :  { %485 = vmatpush3.bf16.msra.mxu0 %v521_v23 }
  0x4b   :  { %486 = vmatprep.subr.bf16.mxu0 %v575_v0 }
  0x4e   :  { %487 = vmatpush3.bf16.msra.mxu0 %v522_v32 }
  0x4f   :  { %488 = vmatprep.subr.bf16.mxu0 %v575_v0 }
  0x52   :  { %489 = vmatpush3.bf16.msra.mxu0 %v523_v33 }
 0x108   :  { %v134_v25 = vpop.f32.mrb[0].mxu0 }
 0x109   :  { %v135_v26 = vadd.f32 %v380_v24, %v134_v25  ;;  %v452_v27 = vpop.f32.mrb[1].mxu0 }
 0x10a   :  { %v137_v28 = vpop.f32.mrb[2].mxu0 }
 0x10b   :  { %v140_v29 = vmax.f32 %v135_v26, 0.0  ;;  %v453_v30 = vpop.f32.mrb[3].mxu0 }
 0x10d   :  { %v141_v31 = vpack.c.bf16 %v140_v29, %v140_v29 }
 0x10f   :  { %471 = vmatmul.mubr.bf16.vlgmr.msra.gmra.mrb[0].mxu1 %v141_v31 }
 0x1e2   :  { %v246_v35 = vpop.f32.mrb[0].mxu1 }
 0x1e3   :  { %v247_v36 = vadd.f32 %v389_v34, %v246_v35  ;;  %v472_v37 = vpop.f32.mrb[1].mxu1 }
 0x1e4   :  { %v249_v38 = vpop.f32.mrb[2].mxu1 }
 0x1e5   :  { %v252_v39 = vmax.f32 %v247_v36, 0.0  ;;  %v473_v40 = vpop.f32.mrb[3].mxu1 }
 0x1e7   :  { %v253_v41 = vpack.c.bf16 %v252_v39, %v252_v39 }
 0x1e9   :  { %491 = vmatmul.mubr.bf16.vlgmr.msra.gmra.mrb[4].mxu0 %v253_v41 }
 0x2bc   :  { %v358_v43 = vpop.f32.mrb[4].mxu0 }
 0x2bd   :  { %v359_v44 = vadd.f32 %v398_v42, %v358_v43  ;;  %v492_v45 = vpop.f32.mrb[5].mxu0 }
 0x2be   :  { %v361_v46 = vpop.f32.mrb[6].mxu0 }
 0x2bf   :  { %364 = vst [vmem:[#allocation5] sm:$0xff] %v359_v44  ;;  %v493_v47 = vpop.f32.mrb[7].mxu0 }
 0x2c0   :  { %557 = shalt.err (!%p554_p12)
}
 0x2c1   :  { %s558_s2 = scalar_lea.hbm %s667_s3, 128 }
 0x2c2   :  { %p559_p13 = scmp.ne.s32.totalorder %s667_s3, %s558_s2  ;;  %p562_p0 = scmp.lt.u32.totalorder %s558_s2, %s667_s3 }
 0x2c4   :  { %p564_p1 = pnand %p562_p0, %p559_p13 }
 0x2c6   :  { %567 = shalt.err (!%p564_p1)
}
 0x2c7   :  { %374 = dma.vmem_to_hbm [thread:$0]  %s372_s6, 128, %s667_s3, [#allocation4]  }
 0x2c8   :  { %570 = dma.done.wait [#allocation4], 128  }
 0x2c9   :  { %571 = vsyncadd [#allocation4], 4294967168 }
 0x2ca   :  { %378 = vsyncpa [#allocation3], 1 }
 0x2cb   :  { %379 = vsyncpa [#allocation4], 1 }

</bundles_post_ra>
